<compile_context>
chip_gen: v5e
topology: v5e:2x2
jax: 0.10.0
libtpu: 0.0.40
codegen_flags: <defaults>
</compile_context>

<pallas_src>
import functools

import jax
import jax.numpy as jnp
from jax.experimental import pallas as pl
from jax.experimental.pallas import tpu as pltpu

_LANES = 128


def _round_up(n, m):
    return ((n + m - 1) // m) * m


def _mlp_softmax2_kernel(x_ref, w1_ref, b1_ref, w2d_ref, b2d_ref, o_ref):
    # Packed, lane-dense layout (G samples per packed row):
    #   x_ref   : [TR, 128]      each row = G samples x in_size lanes
    #   w1_ref  : [128, G*H]     block-diagonal  kron(I_G, W1^T)
    #   b1_ref  : [1,   G*H]     b1 tiled G times
    #   w2d_ref : [G*H, G*2]     block-diagonal "difference" weights (z_i - z_other)
    #   b2d_ref : [1,   G*2]
    #   o_ref   : [TR,  G*2]     packed softmax probabilities
    x = x_ref[...]
    h = jnp.dot(x, w1_ref[...], preferred_element_type=jnp.float32) + b1_ref[...]
    h = jnp.maximum(h, 0.0)                                         # ReLU (VPU)
    d = jnp.dot(h, w2d_ref[...], preferred_element_type=jnp.float32) + b2d_ref[...]
    # 2-way softmax == sigmoid of the pairwise logit difference:
    #   p_i = exp(z_i) / (exp(z_0) + exp(z_1)) = sigmoid(z_i - z_other)
    # d already holds (z_i - z_other) in every lane -> one exp (EUP) + one divide.
    o_ref[...] = 1.0 / (1.0 + jnp.exp(-d))
    # TODO(synk): if profiling shows the f32 MXU passes on the critical path,
    # cast x/h and the block-diagonal weights to bf16 (tolerance permitting) or
    # replace the tiny contractions with VPU broadcast-FMA.


@functools.partial(jax.jit, static_argnames=("tr_cap",))
def network_forward(x, w1, b1, w2, b2, *, tr_cap=4096):
    """Forward of Network.

    x  : [B, input_size] float32
    w1 : [hidden, input_size]   (PyTorch nn.Linear layout)
    b1 : [hidden]
    w2 : [output_size, hidden]
    b2 : [output_size]
    returns [B, output_size] float32 (rows sum to 1)
    """
    B, in_size = x.shape
    hidden = w1.shape[0]
    out_size = w2.shape[0]
    if _LANES % in_size != 0:
        raise ValueError(f"input_size={in_size} must divide {_LANES} for lane packing")
    if out_size != 2:
        # TODO(synk): general output_size needs a grouped lane softmax
        # (log2(O) roll+max steps or a block-diagonal ones-matrix sum).
        raise NotImplementedError("this kernel specializes softmax to output_size == 2")

    G = _LANES // in_size            # samples packed per row (32 for in_size=4)
    H_P = G * hidden                 # packed hidden width  (256)
    O_P = G * out_size               # packed output width  (64)

    x = x.astype(jnp.float32)
    w1 = w1.astype(jnp.float32)
    b1 = b1.astype(jnp.float32)
    w2 = w2.astype(jnp.float32)
    b2 = b2.astype(jnp.float32)

    # Pack G samples per row.  [Bp, in] -> [R, 128] is a free contiguous reshape;
    # the pad copy only happens when B is not already a multiple of G.
    Bp = _round_up(B, G)
    if Bp != B:
        x = jnp.pad(x, ((0, Bp - B), (0, 0)))
    R = Bp // G
    xp = x.reshape(R, _LANES)

    # Block-diagonal weights (tiny; built on device each call).
    w1_bd = jnp.kron(jnp.eye(G, dtype=jnp.float32), w1.T)                 # [128, G*H]
    b1_t = jnp.tile(b1, G).reshape(1, H_P)                                # [1, G*H]
    # Second layer computes the pairwise logit difference directly:
    #   column 0 of each block -> z0 - z1, column 1 -> z1 - z0.
    w2d = w2.T @ jnp.array([[1.0, -1.0], [-1.0, 1.0]], jnp.float32)       # [H, 2]
    w2d_bd = jnp.kron(jnp.eye(G, dtype=jnp.float32), w2d)                 # [G*H, G*2]
    d0 = b2[0] - b2[1]
    b2d_t = jnp.tile(jnp.stack([d0, -d0]), G).reshape(1, O_P)             # [1, G*2]

    # Row-tile sizing: big enough to amortize the ~0.35us/step overhead, small
    # enough for all generations' scoped VMEM, and >=8 tiles when possible so
    # ("parallel",) can shard across v7x's two TensorCores.
    tr_cap = max(8, _round_up(int(tr_cap), 8))
    TR = max(8, min(tr_cap, _round_up(pl.cdiv(R, 8), 8)))
    grid = (pl.cdiv(R, TR),)         # ragged last tile: OOB writes are dropped

    out_p = pl.pallas_call(
        _mlp_softmax2_kernel,
        out_shape=jax.ShapeDtypeStruct((R, O_P), jnp.float32),
        grid=grid,
        in_specs=[
            pl.BlockSpec((TR, _LANES), lambda i: (i, 0)),     # x tile marches over rows
            pl.BlockSpec((_LANES, H_P), lambda i: (0, 0)),    # weights: constant blocks
            pl.BlockSpec((1, H_P), lambda i: (0, 0)),
            pl.BlockSpec((H_P, O_P), lambda i: (0, 0)),
            pl.BlockSpec((1, O_P), lambda i: (0, 0)),
        ],
        out_specs=pl.BlockSpec((TR, O_P), lambda i: (i, 0)),
        compiler_params=pltpu.CompilerParams(
            dimension_semantics=("parallel",),   # independent row tiles -> megacore
        ),
    )(xp, w1_bd, b1_t, w2d_bd, b2d_t)

    out = out_p.reshape(Bp, out_size)            # free reshape back to [Bp, 2]
    return out[:B] if Bp != B else out


def init_params(key, input_size, hidden, output_size):
    """Deterministic init mimicking nn.Linear's U(-1/sqrt(fan_in), 1/sqrt(fan_in))."""
    k1, k2, k3, k4 = jax.random.split(key, 4)
    bound1 = 1.0 / jnp.sqrt(float(input_size))
    bound2 = 1.0 / jnp.sqrt(float(hidden))
    w1 = jax.random.uniform(k1, (hidden, input_size), jnp.float32, -bound1, bound1)
    b1 = jax.random.uniform(k2, (hidden,), jnp.float32, -bound1, bound1)
    w2 = jax.random.uniform(k3, (output_size, hidden), jnp.float32, -bound2, bound2)
    b2 = jax.random.uniform(k4, (output_size,), jnp.float32, -bound2, bound2)
    return w1, b1, w2, b2


def reference_forward(x, w1, b1, w2, b2):
    h = jnp.maximum(x @ w1.T + b1[None, :], 0.0)
    logits = h @ w2.T + b2[None, :]
    return jax.nn.softmax(logits, axis=-1)


if __name__ == "__main__":
    # Flappy-bird style network: 4-dim state -> 2 action probabilities.
    input_size, hidden, output_size = 4, 8, 2

    key = jax.random.PRNGKey(0)
    kx, kx2, kp = jax.random.split(key, 3)
    w1, b1, w2, b2 = init_params(kp, input_size, hidden, output_size)

    # Small, module-consistent batch (exercises the pad-to-group, single-tile path).
    x_small = jax.random.normal(kx, (8, input_size), jnp.float32)
    out_small = jax.block_until_ready(network_forward(x_small, w1, b1, w2, b2))
    ref_small = reference_forward(x_small, w1, b1, w2, b2)
    assert out_small.shape == (8, output_size)
    assert jnp.allclose(out_small, ref_small, atol=1e-4, rtol=1e-4), "mismatch vs reference (small)"
    assert jnp.allclose(jnp.sum(out_small, axis=-1), 1.0, atol=1e-4), "softmax rows must sum to 1"

    # Non-aligned batch with a tiny tile cap to exercise the multi-tile grid and
    # the ragged last tile (no full-batch pad).
    x_big = jax.random.normal(kx2, (300, input_size), jnp.float32)
    out_big = jax.block_until_ready(network_forward(x_big, w1, b1, w2, b2, tr_cap=8))
    ref_big = reference_forward(x_big, w1, b1, w2, b2)
    assert out_big.shape == (300, output_size)
    assert jnp.allclose(out_big, ref_big, atol=1e-4, rtol=1e-4), "mismatch vs reference (gridded)"

    print("KERNEL_OK")
</pallas_src>

<mosaic_0001>
module attributes {stable_mosaic.version = 11 : i64} {
  func.func @_mlp_softmax2_kernel(%arg0: i32, %arg1: memref<8x128xf32, #tpu.memory_space<vmem>>, %arg2: memref<128x256xf32, #tpu.memory_space<vmem>>, %arg3: memref<1x256xf32, #tpu.memory_space<vmem>>, %arg4: memref<256x64xf32, #tpu.memory_space<vmem>>, %arg5: memref<1x64xf32, #tpu.memory_space<vmem>>, %arg6: memref<8x64xf32, #tpu.memory_space<vmem>>) attributes {dimension_semantics = [#tpu.dimension_semantics<parallel>], iteration_bounds = array<i64: 1>, scalar_prefetch = 0 : i64, scratch_operands = 0 : i64, tpu.core_type = #tpu.core_type<tc>, window_params = [{transform_indices = @transform_0, window_bounds = array<i64: 8, 128>}, {pipeline_mode = #tpu.pipeline_mode<synchronous>, transform_indices = @transform_1, window_bounds = array<i64: 128, 256>}, {pipeline_mode = #tpu.pipeline_mode<synchronous>, transform_indices = @transform_2, window_bounds = array<i64: 1, 256>}, {pipeline_mode = #tpu.pipeline_mode<synchronous>, transform_indices = @transform_3, window_bounds = array<i64: 256, 64>}, {pipeline_mode = #tpu.pipeline_mode<synchronous>, transform_indices = @transform_4, window_bounds = array<i64: 1, 64>}, {transform_indices = @transform_5, window_bounds = array<i64: 8, 64>}]} {
    %c0 = arith.constant 0 : index
    %c0_0 = arith.constant 0 : index
    %0 = vector.load %arg1[%c0, %c0_0] : memref<8x128xf32, #tpu.memory_space<vmem>>, vector<8x128xf32>
    %c0_1 = arith.constant 0 : index
    %c0_2 = arith.constant 0 : index
    %1 = vector.load %arg2[%c0_1, %c0_2] : memref<128x256xf32, #tpu.memory_space<vmem>>, vector<128x256xf32>
    %cst = arith.constant dense<0.000000e+00> : vector<8x256xf32>
    %2 = tpu.matmul %0, %1, %cst {dimension_numbers = #tpu.dot_dimension_numbers<[1], [0], [0], [1], [0, 0, 1, 1], [], []>} : vector<8x128xf32>, vector<128x256xf32>, vector<8x256xf32> -> vector<8x256xf32>
    %c0_3 = arith.constant 0 : index
    %c0_4 = arith.constant 0 : index
    %3 = vector.load %arg3[%c0_3, %c0_4] : memref<1x256xf32, #tpu.memory_space<vmem>>, vector<1x256xf32>
    %4 = vector.broadcast %3 : vector<1x256xf32> to vector<8x256xf32>
    %5 = arith.addf %2, %4 : vector<8x256xf32>
    %cst_5 = arith.constant 0.000000e+00 : f32
    %6 = vector.broadcast %cst_5 : f32 to vector<8x256xf32>
    %7 = arith.maximumf %5, %6 : vector<8x256xf32>
    %c0_6 = arith.constant 0 : index
    %c0_7 = arith.constant 0 : index
    %8 = vector.load %arg4[%c0_6, %c0_7] : memref<256x64xf32, #tpu.memory_space<vmem>>, vector<256x64xf32>
    %cst_8 = arith.constant dense<0.000000e+00> : vector<8x64xf32>
    %9 = tpu.matmul %7, %8, %cst_8 {dimension_numbers = #tpu.dot_dimension_numbers<[1], [0], [0], [1], [0, 0, 1, 1], [], []>} : vector<8x256xf32>, vector<256x64xf32>, vector<8x64xf32> -> vector<8x64xf32>
    %c0_9 = arith.constant 0 : index
    %c0_10 = arith.constant 0 : index
    %10 = vector.load %arg5[%c0_9, %c0_10] : memref<1x64xf32, #tpu.memory_space<vmem>>, vector<1x64xf32>
    %11 = vector.broadcast %10 : vector<1x64xf32> to vector<8x64xf32>
    %12 = arith.addf %9, %11 : vector<8x64xf32>
    %cst_11 = arith.constant 0.000000e+00 : f32
    %13 = vector.broadcast %cst_11 : f32 to vector<8x64xf32>
    %14 = arith.subf %13, %12 : vector<8x64xf32>
    %15 = math.exp %14 : vector<8x64xf32>
    %cst_12 = arith.constant 1.000000e+00 : f32
    %16 = vector.broadcast %cst_12 : f32 to vector<8x64xf32>
    %17 = arith.addf %16, %15 : vector<8x64xf32>
    %cst_13 = arith.constant 1.000000e+00 : f32
    %18 = vector.broadcast %cst_13 : f32 to vector<8x64xf32>
    %19 = arith.divf %18, %17 : vector<8x64xf32>
    %c0_14 = arith.constant 0 : index
    %c0_15 = arith.constant 0 : index
    %20 = vector.load %arg6[%c0_14, %c0_15] : memref<8x64xf32, #tpu.memory_space<vmem>>, vector<8x64xf32>
    tpu.vector_store %arg6[%c0_14, %c0_15], %19 {strides = array<i32>} : memref<8x64xf32, #tpu.memory_space<vmem>>, vector<8x64xf32>,
    return
  }
  func.func @transform_0(%arg0: i32) -> (i32, i32) {
    %c0_i32 = arith.constant 0 : i32
    %c0_i32_0 = arith.constant 0 : i32
    return %arg0, %c0_i32 : i32, i32
  }
  func.func @transform_1(%arg0: i32) -> (i32, i32) {
    %c0_i32 = arith.constant 0 : i32
    %c0_i32_0 = arith.constant 0 : i32
    %c0_i32_1 = arith.constant 0 : i32
    return %c0_i32, %c0_i32_0 : i32, i32
  }
  func.func @transform_2(%arg0: i32) -> (i32, i32) {
    %c0_i32 = arith.constant 0 : i32
    %c0_i32_0 = arith.constant 0 : i32
    %c0_i32_1 = arith.constant 0 : i32
    return %c0_i32, %c0_i32_0 : i32, i32
  }
  func.func @transform_3(%arg0: i32) -> (i32, i32) {
    %c0_i32 = arith.constant 0 : i32
    %c0_i32_0 = arith.constant 0 : i32
    %c0_i32_1 = arith.constant 0 : i32
    return %c0_i32, %c0_i32_0 : i32, i32
  }
  func.func @transform_4(%arg0: i32) -> (i32, i32) {
    %c0_i32 = arith.constant 0 : i32
    %c0_i32_0 = arith.constant 0 : i32
    %c0_i32_1 = arith.constant 0 : i32
    return %c0_i32, %c0_i32_0 : i32, i32
  }
  func.func @transform_5(%arg0: i32) -> (i32, i32) {
    %c0_i32 = arith.constant 0 : i32
    %c0_i32_0 = arith.constant 0 : i32
    return %arg0, %c0_i32 : i32, i32
  }
}

</mosaic_0001>

<bundles_post_ra>
// kernel: tile.18
= control target key start
LH: loop header
LB: loop body
LE: loop exit
PB: predicated region body
PF: predicated region fallthrough
CT: control target
= control target key end

     0   :  { %s40_s0 = inlined_call_operand.vmem [shape: f32[2], index: 0, kind: input, shape index: {}]   ;;  %s41_s1 = inlined_call_operand.vmem [shape: f32[32,2], index: 1, kind: output, shape index: {}]  }
   0x1   :  { %v4_v0 = vld [vmem:[%s40_s0] ss:$0 sm:$0xff] }
   0x2   :  { %5 = vst [vmem:[%s41_s1] sm:$0xff] %v4_v0 }
   0x3   :  { %12 = vst [vmem:[%s41_s1 + $0x8] sm:$0xff] %v4_v0 }
   0x4   :  { %13 = vst [vmem:[%s41_s1 + $0x10] sm:$0xff] %v4_v0 }
   0x5   :  { %14 = vst [vmem:[%s41_s1 + $0x18] sm:$0xff] %v4_v0 }

// kernel: tile.19
= control target key start
LH: loop header
LB: loop body
LE: loop exit
PB: predicated region body
PF: predicated region fallthrough
CT: control target
= control target key end

     0   :  { %s259_s10 = smov 62   ;;  %s260_s11 = smov 58   ;;  %vm3_vm0 = vcmask 15360   ;;  %vm9_vm1 = vcmask 523760   ;;  %vm15_vm2 = vcmask 507360   ;;  %vm21_vm3 = vcmask 490960   ;;  %s399_s0 = inlined_call_operand.vmem [shape: f32[32,2], index: 0, kind: input, shape index: {}]   ;;  %s400_s1 = inlined_call_operand.vmem [shape: f32[1,64], index: 1, kind: output, shape index: {}]  }
   0x1   :  { %v197_v0 = vld [vmem:[%s399_s0 + $0x1f] sm:$0x1]   ;;  %v199_v1 = vld [vmem:[%s399_s0 + $0x1d] sm:$0x1]   ;;  %v201_v2 = vld [vmem:[%s399_s0 + $0x1b] sm:$0x1]  }
   0x2   :  { %7 = vrot.lane.b32.xlu0 %v197_v0, %s259_s10  ;;  %19 = vrot.lane.b32.xlu1 %v199_v1, %s260_s11  ;;  %s261_s14 = smov 54   ;;  %v198_v3 = vld [vmem:[%s399_s0 + $0x1e] sm:$0x1]   ;;  %v200_v4 = vld [vmem:[%s399_s0 + $0x1c] sm:$0x1]   ;;  %s262_s19 = smov 60  }
   0x3   :  { %31 = vrot.lane.b32.xlu2 %v201_v2, %s261_s14  ;;  %s263_s20 = smov 56   ;;  %v202_v5 = vld [vmem:[%s399_s0 + $0x1a] sm:$0x1]   ;;  %s264_s23 = smov 52   ;;  %v203_v6 = vld [vmem:[%s399_s0 + $0x19] sm:$0x1]  }
   0x4   :  { %v204_v7 = vld [vmem:[%s399_s0 + $0x18] sm:$0x1]   ;;  %s265_s28 = smov 50   ;;  %s266_s29 = smov 48   ;;  %v205_v8 = vld [vmem:[%s399_s0 + $0x17] sm:$0x1]  }
   0x5   :  { %s267_s3 = smov 46   ;;  %v206_v9 = vld [vmem:[%s399_s0 + $0x16] sm:$0x1]   ;;  %v207_v10 = vld [vmem:[%s399_s0 + $0x15] sm:$0x1]   ;;  %s268_s8 = smov 44  }
   0x6   :  { %s269_s9 = smov 42   ;;  %v208_v11 = vld [vmem:[%s399_s0 + $0x14] sm:$0x1]   ;;  %s270_s12 = smov 40   ;;  %v209_v12 = vld [vmem:[%s399_s0 + $0x13] sm:$0x1]  }
   0x7   :  { %v210_v13 = vld [vmem:[%s399_s0 + $0x12] sm:$0x1]   ;;  %s271_s17 = smov 38   ;;  %s272_s18 = smov 36   ;;  %v211_v14 = vld [vmem:[%s399_s0 + $0x11] sm:$0x1]  }
   0x8   :  { %s273_s21 = smov 34   ;;  %v212_v15 = vld [vmem:[%s399_s0 + $0x10] sm:$0x1]   ;;  %v213_v16 = vld [vmem:[%s399_s0 + $0xf] sm:$0x1]   ;;  %s274_s26 = smov 32  }
   0x9   :  { %s275_s27 = smov 30   ;;  %v214_v17 = vld [vmem:[%s399_s0 + $0xe] sm:$0x1]   ;;  %s276_s30 = smov 28   ;;  %v215_v18 = vld [vmem:[%s399_s0 + $0xd] sm:$0x1]  }
   0xa   :  { %13 = vrot.lane.b32.xlu0 %v198_v3, %s262_s19  ;;  %25 = vrot.lane.b32.xlu1 %v200_v4, %s263_s20  ;;  %v216_v19 = vld [vmem:[%s399_s0 + $0xc] sm:$0x1]   ;;  %s277_s6 = smov 26   ;;  %s278_s7 = smov 24   ;;  %v217_v20 = vld [vmem:[%s399_s0 + $0xb] sm:$0x1]  }
   0xb   :  { %37 = vrot.lane.b32.xlu2 %v202_v5, %s264_s23  ;;  %s279_s10 = smov 22   ;;  %v218_v21 = vld [vmem:[%s399_s0 + $0xa] sm:$0x1]   ;;  %v219_v22 = vld [vmem:[%s399_s0 + $0x9] sm:$0x1]   ;;  %s280_s15 = smov 20  }
   0xc   :  { %s281_s16 = smov 18   ;;  %v220_v23 = vld [vmem:[%s399_s0 + $0x8] sm:$0x1]   ;;  %s282_s19 = smov 16   ;;  %v221_v24 = vld [vmem:[%s399_s0 + $0x7] sm:$0x1]  }
   0xd   :  { %v222_v25 = vld [vmem:[%s399_s0 + $0x6] sm:$0x1]   ;;  %s283_s24 = smov 14   ;;  %s284_s25 = smov 12   ;;  %v223_v26 = vld [vmem:[%s399_s0 + $0x5] sm:$0x1]  }
   0xe   :  { %v224_v27 = vld [vmem:[%s399_s0 + $0x4] sm:$0x1]   ;;  %v225_v28 = vld [vmem:[%s399_s0 + $0x3] sm:$0x1]   ;;  %s286_s4 = smov 8   ;;  %s287_s5 = smov 6  }
   0xf   :  { %v226_v29 = vld [vmem:[%s399_s0 + $0x2] sm:$0x1]   ;;  %v227_v30 = vld [vmem:[%s399_s0 + $0x1] sm:$0x1]   ;;  %s289_s11 = smov 2   ;;  %vm27_vm4 = vcmask 474560  }
  0x10   :  { %v2_v31 = vld [vmem:[%s399_s0] sm:$0x1]   ;;  %vm33_vm5 = vcmask 458160   ;;  %vm39_vm6 = vcmask 441760   ;;  %vm45_vm7 = vcmask 425360   ;;  %vm51_vm8 = vcmask 408960  }
  0x11   :  { %4 = vst.msk [vmem:[#allocation0] sm:$0x1] %vm3_vm0, %v2_v31   ;;  %vm57_vm9 = vcmask 392560   ;;  %vm63_vm10 = vcmask 376160   ;;  %vm69_vm11 = vcmask 359760   ;;  %vm75_vm12 = vcmask 343360  }
  0x12   :  { %43 = vrot.lane.b32.xlu0 %v203_v6, %s265_s28  ;;  %49 = vrot.lane.b32.xlu1 %v204_v7, %s266_s29  ;;  %s285_s28 = smov 10   ;;  %vm81_vm13 = vcmask 326960   ;;  %vm87_vm14 = vcmask 310560   ;;  %vm93_vm15 = vcmask 294160   ;;  %vm99_vm0 = vcmask 277760  }
  0x13   :  { %55 = vrot.lane.b32.xlu2 %v205_v8, %s267_s3 }
  0x1a   :  { %61 = vrot.lane.b32.xlu0 %v206_v9, %s268_s8  ;;  %67 = vrot.lane.b32.xlu1 %v207_v10, %s269_s9  ;;  %s288_s8 = smov 4  }
  0x1b   :  { %73 = vrot.lane.b32.xlu2 %v208_v11, %s270_s12 }
  0x22   :  { %79 = vrot.lane.b32.xlu0 %v209_v12, %s271_s17  ;;  %85 = vrot.lane.b32.xlu1 %v210_v13, %s272_s18 }
  0x23   :  { %91 = vrot.lane.b32.xlu2 %v211_v14, %s273_s21 }
  0x2a   :  { %97 = vrot.lane.b32.xlu0 %v212_v15, %s274_s26  ;;  %103 = vrot.lane.b32.xlu1 %v213_v16, %s275_s27 }
  0x2b   :  { %109 = vrot.lane.b32.xlu2 %v214_v17, %s276_s30 }
  0x32   :  { %115 = vrot.lane.b32.xlu0 %v215_v18, %s277_s6  ;;  %121 = vrot.lane.b32.xlu1 %v216_v19, %s278_s7 }
  0x33   :  { %127 = vrot.lane.b32.xlu2 %v217_v20, %s279_s10 }
  0x3a   :  { %133 = vrot.lane.b32.xlu0 %v218_v21, %s280_s15  ;;  %139 = vrot.lane.b32.xlu1 %v219_v22, %s281_s16 }
  0x3b   :  { %145 = vrot.lane.b32.xlu2 %v220_v23, %s282_s19 }
  0x42   :  { %151 = vrot.lane.b32.xlu0 %v221_v24, %s283_s24  ;;  %157 = vrot.lane.b32.xlu1 %v222_v25, %s284_s25 }
  0x43   :  { %163 = vrot.lane.b32.xlu2 %v223_v26, %s285_s28 }
  0x4a   :  { %169 = vrot.lane.b32.xlu0 %v224_v27, %s286_s4  ;;  %175 = vrot.lane.b32.xlu1 %v225_v28, %s287_s5 }
  0x4b   :  { %181 = vrot.lane.b32.xlu2 %v226_v29, %s288_s8 }
  0x52   :  { %187 = vrot.lane.b32.xlu0 %v227_v30, %s289_s11 }
  0x5d   :  { %v32_v32 = vpop.permute.xlu2 %31  }
  0x65   :  { %v38_v33 = vpop.permute.xlu2 %37  }
  0x6d   :  { %v56_v34 = vpop.permute.xlu2 %55  }
  0x74   :  { %v8_v35 = vpop.permute.xlu0 %7   ;;  %v20_v36 = vpop.permute.xlu1 %19  }
  0x75   :  { %10 = vst.msk [vmem:[#allocation0] sm:$0x1] %vm9_vm1, %v8_v35   ;;  %v74_v37 = vpop.permute.xlu2 %73   ;;  %vm105_vm1 = vcmask 261360  }
  0x7c   :  { %v14_v38 = vpop.permute.xlu0 %13   ;;  %v26_v39 = vpop.permute.xlu1 %25  }
  0x7d   :  { %16 = vst.msk [vmem:[#allocation0] sm:$0x1] %vm15_vm2, %v14_v38   ;;  %v92_v40 = vpop.permute.xlu2 %91   ;;  %vm111_vm2 = vcmask 244960  }
  0x7e   :  { %22 = vst.msk [vmem:[#allocation0] sm:$0x1] %vm21_vm3, %v20_v36   ;;  %vm117_vm3 = vcmask 228560  }
  0x7f   :  { %28 = vst.msk [vmem:[#allocation0] sm:$0x1] %vm27_vm4, %v26_v39   ;;  %vm123_vm4 = vcmask 212160  }
  0x80   :  { %34 = vst.msk [vmem:[#allocation0] sm:$0x1] %vm33_vm5, %v32_v32   ;;  %vm129_vm5 = vcmask 195760  }
  0x81   :  { %40 = vst.msk [vmem:[#allocation0] sm:$0x1] %vm39_vm6, %v38_v33   ;;  %vm135_vm6 = vcmask 179360  }
  0x84   :  { %v44_v41 = vpop.permute.xlu0 %43   ;;  %v50_v42 = vpop.permute.xlu1 %49  }
  0x85   :  { %46 = vst.msk [vmem:[#allocation0] sm:$0x1] %vm45_vm7, %v44_v41   ;;  %v110_v43 = vpop.permute.xlu2 %109   ;;  %vm141_vm7 = vcmask 162960  }
  0x86   :  { %52 = vst.msk [vmem:[#allocation0] sm:$0x1] %vm51_vm8, %v50_v42   ;;  %vm147_vm8 = vcmask 146560  }
  0x87   :  { %58 = vst.msk [vmem:[#allocation0] sm:$0x1] %vm57_vm9, %v56_v34   ;;  %vm153_vm9 = vcmask 130160  }
  0x8c   :  { %v62_v44 = vpop.permute.xlu0 %61   ;;  %v68_v45 = vpop.permute.xlu1 %67  }
  0x8d   :  { %64 = vst.msk [vmem:[#allocation0] sm:$0x1] %vm63_vm10, %v62_v44   ;;  %v128_v46 = vpop.permute.xlu2 %127   ;;  %vm159_vm10 = vcmask 113760  }
  0x8e   :  { %70 = vst.msk [vmem:[#allocation0] sm:$0x1] %vm69_vm11, %v68_v45   ;;  %vm165_vm11 = vcmask 97360  }
  0x8f   :  { %76 = vst.msk [vmem:[#allocation0] sm:$0x1] %vm75_vm12, %v74_v37   ;;  %vm171_vm12 = vcmask 80960  }
  0x94   :  { %v80_v47 = vpop.permute.xlu0 %79   ;;  %v86_v48 = vpop.permute.xlu1 %85  }
  0x95   :  { %82 = vst.msk [vmem:[#allocation0] sm:$0x1] %vm81_vm13, %v80_v47   ;;  %v146_v49 = vpop.permute.xlu2 %145   ;;  %vm177_vm13 = vcmask 64560  }
  0x96   :  { %88 = vst.msk [vmem:[#allocation0] sm:$0x1] %vm87_vm14, %v86_v48   ;;  %vm183_vm14 = vcmask 48160  }
  0x97   :  { %94 = vst.msk [vmem:[#allocation0] sm:$0x1] %vm93_vm15, %v92_v40   ;;  %vm189_vm15 = vcmask 31760  }
  0x9c   :  { %v98_v50 = vpop.permute.xlu0 %97   ;;  %v104_v51 = vpop.permute.xlu1 %103  }
  0x9d   :  { %100 = vst.msk [vmem:[#allocation0] sm:$0x1] %vm99_vm0, %v98_v50   ;;  %v164_v52 = vpop.permute.xlu2 %163  }
  0x9e   :  { %106 = vst.msk [vmem:[#allocation0] sm:$0x1] %vm105_vm1, %v104_v51  }
  0x9f   :  { %112 = vst.msk [vmem:[#allocation0] sm:$0x1] %vm111_vm2, %v110_v43  }
  0xa4   :  { %v116_v53 = vpop.permute.xlu0 %115   ;;  %v122_v54 = vpop.permute.xlu1 %121  }
  0xa5   :  { %118 = vst.msk [vmem:[#allocation0] sm:$0x1] %vm117_vm3, %v116_v53   ;;  %v182_v55 = vpop.permute.xlu2 %181  }
  0xa6   :  { %124 = vst.msk [vmem:[#allocation0] sm:$0x1] %vm123_vm4, %v122_v54  }
  0xa7   :  { %130 = vst.msk [vmem:[#allocation0] sm:$0x1] %vm129_vm5, %v128_v46  }
  0xac   :  { %v134_v56 = vpop.permute.xlu0 %133   ;;  %v140_v57 = vpop.permute.xlu1 %139  }
  0xad   :  { %136 = vst.msk [vmem:[#allocation0] sm:$0x1] %vm135_vm6, %v134_v56  }
  0xae   :  { %142 = vst.msk [vmem:[#allocation0] sm:$0x1] %vm141_vm7, %v140_v57  }
  0xaf   :  { %148 = vst.msk [vmem:[#allocation0] sm:$0x1] %vm147_vm8, %v146_v49  }
  0xb4   :  { %v152_v58 = vpop.permute.xlu0 %151   ;;  %v158_v59 = vpop.permute.xlu1 %157  }
  0xb5   :  { %154 = vst.msk [vmem:[#allocation0] sm:$0x1] %vm153_vm9, %v152_v58  }
  0xb6   :  { %160 = vst.msk [vmem:[#allocation0] sm:$0x1] %vm159_vm10, %v158_v59  }
  0xb7   :  { %166 = vst.msk [vmem:[#allocation0] sm:$0x1] %vm165_vm11, %v164_v52  }
  0xbc   :  { %v170_v60 = vpop.permute.xlu0 %169   ;;  %v176_v61 = vpop.permute.xlu1 %175  }
  0xbd   :  { %172 = vst.msk [vmem:[#allocation0] sm:$0x1] %vm171_vm12, %v170_v60  }
  0xbe   :  { %178 = vst.msk [vmem:[#allocation0] sm:$0x1] %vm177_vm13, %v176_v61  }
  0xbf   :  { %184 = vst.msk [vmem:[#allocation0] sm:$0x1] %vm183_vm14, %v182_v55  }
  0xc4   :  { %v188_v62 = vpop.permute.xlu0 %187  }
  0xc5   :  { %190 = vst.msk [vmem:[#allocation0] sm:$0x1] %vm189_vm15, %v188_v62  }
  0xcc   :  { %v193_v63 = vld [vmem:[#allocation0] sm:$0x1] }
  0xcd   :  { %196 = vst [vmem:[%s400_s1] sm:$0x1] %v193_v63 }

// kernel: tile.13
= control target key start
LH: loop header
LB: loop body
LE: loop exit
PB: predicated region body
PF: predicated region fallthrough
CT: control target
= control target key end

     0   :  { %s40_s0 = inlined_call_operand.vmem [shape: f32[8], index: 0, kind: input, shape index: {}]   ;;  %s41_s1 = inlined_call_operand.vmem [shape: f32[32,8], index: 1, kind: output, shape index: {}]  }
   0x1   :  { %v4_v0 = vld [vmem:[%s40_s0] ss:$0 sm:$0xff] }
   0x2   :  { %5 = vst [vmem:[%s41_s1] sm:$0xff] %v4_v0 }
   0x3   :  { %12 = vst [vmem:[%s41_s1 + $0x8] sm:$0xff] %v4_v0 }
   0x4   :  { %13 = vst [vmem:[%s41_s1 + $0x10] sm:$0xff] %v4_v0 }
   0x5   :  { %14 = vst [vmem:[%s41_s1 + $0x18] sm:$0xff] %v4_v0 }

// kernel: tile.14
= control target key start
LH: loop header
LB: loop body
LE: loop exit
PB: predicated region body
PF: predicated region fallthrough
CT: control target
= control target key end

     0   :  { %s7_s6 = smov 3  ;;  %s21_s9 = smov 3  ;;  %vm4_vm0 = vcmask 64512   ;;  %vm11_vm1 = vcmask 1048512   ;;  %vm18_vm2 = vcmask 982912   ;;  %vm25_vm3 = vcmask 917312   ;;  %s233_s0 = inlined_call_operand.vmem [shape: f32[32,8], index: 0, kind: input, shape index: {}]   ;;  %s234_s1 = inlined_call_operand.vmem [shape: f32[1,256], index: 1, kind: output, shape index: {}]  }
   0x1   :  { %v123_v0 = vld [vmem:[%s233_s0 + $0xf] ss:$16 sm:%s7_s6]   ;;  %s154_s10 = smov 120   ;;  %v125_v1 = vld [vmem:[%s233_s0 + $0xd] ss:$16 sm:%s21_s9]   ;;  %s155_s13 = smov 104  }
   0x2   :  { %9 = vrot.lane.b32.xlu0 %v123_v0, %s154_s10  ;;  %23 = vrot.lane.b32.xlu1 %v125_v1, %s155_s13  ;;  %s14_s14 = smov 3  ;;  %s28_s15 = smov 3  ;;  %vm32_vm4 = vcmask 851712   ;;  %vm39_vm5 = vcmask 786112   ;;  %vm46_vm6 = vcmask 720512   ;;  %vm53_vm7 = vcmask 654912  }
   0x3   :  { %v124_v2 = vld [vmem:[%s233_s0 + $0xe] ss:$16 sm:%s14_s14]   ;;  %v126_v3 = vld [vmem:[%s233_s0 + $0xc] ss:$16 sm:%s28_s15]   ;;  %s35_s20 = smov 3  ;;  %s156_s23 = smov 112  }
   0x4   :  { %v127_v4 = vld [vmem:[%s233_s0 + $0xb] ss:$16 sm:%s35_s20]   ;;  %s157_s24 = smov 88   ;;  %s158_s25 = smov 96   ;;  %vm60_vm8 = vcmask 589312   ;;  %vm67_vm9 = vcmask 523712  }
   0x5   :  { %37 = vrot.lane.b32.xlu2 %v127_v4, %s157_s24  ;;  %s49_s26 = smov 3  ;;  %s42_s27 = smov 3  ;;  %vm74_vm10 = vcmask 458112   ;;  %vm81_vm11 = vcmask 392512   ;;  %vm88_vm12 = vcmask 326912   ;;  %vm95_vm13 = vcmask 261312  }
   0x6   :  { %s56_s28 = smov 3  ;;  %v129_v5 = vld [vmem:[%s233_s0 + $0x9] ss:$16 sm:%s49_s26]   ;;  %v128_v6 = vld [vmem:[%s233_s0 + $0xa] ss:$16 sm:%s42_s27]   ;;  %s159_s6 = smov 72  }
   0x7   :  { %v130_v7 = vld [vmem:[%s233_s0 + $0x8] ss:$16 sm:%s56_s28]   ;;  %s160_s7 = smov 80   ;;  %s161_s8 = smov 64   ;;  %vm102_vm14 = vcmask 195712   ;;  %vm109_vm15 = vcmask 130112  }
   0x8   :  { %s70_s9 = smov 3  ;;  %s63_s10 = smov 3 }
   0x9   :  { %s77_s11 = smov 3  ;;  %v132_v8 = vld [vmem:[%s233_s0 + $0x6] ss:$16 sm:%s70_s9]   ;;  %v131_v9 = vld [vmem:[%s233_s0 + $0x7] ss:$16 sm:%s63_s10]   ;;  %s162_s18 = smov 48  }
   0xa   :  { %16 = vrot.lane.b32.xlu0 %v124_v2, %s156_s23  ;;  %30 = vrot.lane.b32.xlu1 %v126_v3, %s158_s25  ;;  %v133_v10 = vld [vmem:[%s233_s0 + $0x5] ss:$16 sm:%s77_s11]   ;;  %s163_s19 = smov 56   ;;  %s164_s20 = smov 40  }
   0xb   :  { %s91_s21 = smov 3  ;;  %s84_s22 = smov 3 }
   0xc   :  { %s98_s23 = smov 3  ;;  %v135_v11 = vld [vmem:[%s233_s0 + $0x3] ss:$16 sm:%s91_s21]   ;;  %v134_v12 = vld [vmem:[%s233_s0 + $0x4] ss:$16 sm:%s84_s22]   ;;  %s165_s30 = smov 24  }
   0xd   :  { %44 = vrot.lane.b32.xlu2 %v128_v6, %s160_s7  ;;  %v136_v13 = vld [vmem:[%s233_s0 + $0x2] ss:$16 sm:%s98_s23]   ;;  %s166_s2 = smov 32   ;;  %s167_s3 = smov 16  }
   0xe   :  { %s105_s4 = smov 3  ;;  %s168_s7 = smov 8  }
   0xf   :  { %v137_v14 = vld [vmem:[%s233_s0 + $0x1] ss:$16 sm:%s105_s4]  }
  0x12   :  { %51 = vrot.lane.b32.xlu0 %v129_v5, %s159_s6  ;;  %58 = vrot.lane.b32.xlu1 %v130_v7, %s161_s8  ;;  %s2_s8 = smov 3 }
  0x13   :  { %v3_v15 = vld [vmem:[%s233_s0] ss:$16 sm:%s2_s8]  }
  0x14   :  { %5 = vst.msk [vmem:[#allocation0] ss:$8 sm:$0x3] %vm4_vm0, %v3_v15  }
  0x15   :  { %65 = vrot.lane.b32.xlu2 %v131_v9, %s163_s19 }
  0x1a   :  { %72 = vrot.lane.b32.xlu0 %v132_v8, %s162_s18  ;;  %79 = vrot.lane.b32.xlu1 %v133_v10, %s164_s20 }
  0x1d   :  { %86 = vrot.lane.b32.xlu2 %v134_v12, %s166_s2 }
  0x22   :  { %93 = vrot.lane.b32.xlu0 %v135_v11, %s165_s30  ;;  %100 = vrot.lane.b32.xlu1 %v136_v13, %s167_s3 }
  0x25   :  { %107 = vrot.lane.b32.xlu2 %v137_v14, %s168_s7 }
  0x5f   :  { %v38_v16 = vpop.permute.xlu2 %37  }
  0x67   :  { %v45_v17 = vpop.permute.xlu2 %44  }
  0x6f   :  { %v66_v19 = vpop.permute.xlu2 %65  }
  0x74   :  { %v10_v18 = vpop.permute.xlu0 %9   ;;  %v24_v20 = vpop.permute.xlu1 %23  }
  0x75   :  { %12 = vst.msk [vmem:[#allocation0] ss:$8 sm:$0x3] %vm11_vm1, %v10_v18  }
  0x77   :  { %v87_v22 = vpop.permute.xlu2 %86  }
  0x7c   :  { %v17_v21 = vpop.permute.xlu0 %16   ;;  %v31_v23 = vpop.permute.xlu1 %30  }
  0x7d   :  { %19 = vst.msk [vmem:[#allocation0] ss:$8 sm:$0x3] %vm18_vm2, %v17_v21  }
  0x7e   :  { %26 = vst.msk [vmem:[#allocation0] ss:$8 sm:$0x3] %vm25_vm3, %v24_v20  }
  0x7f   :  { %33 = vst.msk [vmem:[#allocation0] ss:$8 sm:$0x3] %vm32_vm4, %v31_v23   ;;  %v108_v25 = vpop.permute.xlu2 %107  }
  0x80   :  { %40 = vst.msk [vmem:[#allocation0] ss:$8 sm:$0x3] %vm39_vm5, %v38_v16  }
  0x81   :  { %47 = vst.msk [vmem:[#allocation0] ss:$8 sm:$0x3] %vm46_vm6, %v45_v17  }
  0x84   :  { %v52_v24 = vpop.permute.xlu0 %51   ;;  %v59_v26 = vpop.permute.xlu1 %58  }
  0x85   :  { %54 = vst.msk [vmem:[#allocation0] ss:$8 sm:$0x3] %vm53_vm7, %v52_v24  }
  0x86   :  { %61 = vst.msk [vmem:[#allocation0] ss:$8 sm:$0x3] %vm60_vm8, %v59_v26  }
  0x87   :  { %68 = vst.msk [vmem:[#allocation0] ss:$8 sm:$0x3] %vm67_vm9, %v66_v19  }
  0x8c   :  { %v73_v27 = vpop.permute.xlu0 %72   ;;  %v80_v28 = vpop.permute.xlu1 %79  }
  0x8d   :  { %75 = vst.msk [vmem:[#allocation0] ss:$8 sm:$0x3] %vm74_vm10, %v73_v27  }
  0x8e   :  { %82 = vst.msk [vmem:[#allocation0] ss:$8 sm:$0x3] %vm81_vm11, %v80_v28  }
  0x8f   :  { %89 = vst.msk [vmem:[#allocation0] ss:$8 sm:$0x3] %vm88_vm12, %v87_v22  }
  0x94   :  { %v94_v29 = vpop.permute.xlu0 %93   ;;  %v101_v30 = vpop.permute.xlu1 %100  }
  0x95   :  { %96 = vst.msk [vmem:[#allocation0] ss:$8 sm:$0x3] %vm95_vm13, %v94_v29  }
  0x96   :  { %103 = vst.msk [vmem:[#allocation0] ss:$8 sm:$0x3] %vm102_vm14, %v101_v30  }
  0x97   :  { %110 = vst.msk [vmem:[#allocation0] ss:$8 sm:$0x3] %vm109_vm15, %v108_v25  }
  0x9e   :  { %v113_v31 = vld [vmem:[#allocation0] sm:$0x1]  ;;  %v118_v32 = vld [vmem:[#allocation0 + $0x8] sm:$0x1] }
  0x9f   :  { %116 = vst [vmem:[%s234_s1] sm:$0x1] %v113_v31 }
  0xa0   :  { %138 = vst [vmem:[%s234_s1 + $0x1] sm:$0x1] %v118_v32 }

// kernel: network_forward.1
= control target key start
LH: loop header
LB: loop body
LE: loop exit
PB: predicated region body
PF: predicated region fallthrough
CT: control target
= control target key end

     0   :  { %vm196_vm3 = vcmask 523264   ;;  %s478_s0 = inlined_call_operand.vmem [shape: f32[1,128], index: 0, kind: input, shape index: {}]   ;;  %s479_s1 = inlined_call_operand.vmem [shape: f32[128,256], index: 1, kind: input, shape index: {}]   ;;  %s480_s2 = inlined_call_operand.vmem [shape: f32[1,256], index: 2, kind: input, shape index: {}]   ;;  %s481_s3 = inlined_call_operand.vmem [shape: f32[256,64], index: 3, kind: input, shape index: {}]   ;;  %s482_s4 = inlined_call_operand.vmem [shape: f32[1,64], index: 4, kind: input, shape index: {}]   ;;  %s483_s5 = inlined_call_operand.vmem [shape: f32[1,64], index: 5, kind: output, shape index: {}]  }
   0x1   :  { %v51_v0 = vld [vmem:[%s479_s1 + $0xf0] sm:$0xff]  ;;  %v49_v1 = vld [vmem:[%s479_s1 + $0xe0] sm:$0xff]  ;;  %v52_v2 = vld [vmem:[%s479_s1 + $0xf8] sm:$0xff] }
   0x2   :  { %59 = vmatpush.msra.mxu0 %v51_v0  ;;  %79 = vmatpush.msra.mxu1 %v52_v2  ;;  %v50_v3 = vld [vmem:[%s479_s1 + $0xe8] sm:$0xff]  ;;  %v47_v4 = vld [vmem:[%s479_s1 + $0xd0] sm:$0xff]  ;;  %v48_v5 = vld [vmem:[%s479_s1 + $0xd8] sm:$0xff] }
   0x3   :  { %v45_v6 = vld [vmem:[%s479_s1 + $0xc0] sm:$0xff]  ;;  %v46_v7 = vld [vmem:[%s479_s1 + $0xc8] sm:$0xff]  ;;  %v43_v8 = vld [vmem:[%s479_s1 + $0xb0] sm:$0xff] }
   0x4   :  { %60 = vmatpush.msra.mxu0 %v49_v1  ;;  %80 = vmatpush.msra.mxu1 %v50_v3  ;;  %v44_v9 = vld [vmem:[%s479_s1 + $0xb8] sm:$0xff]  ;;  %v41_v10 = vld [vmem:[%s479_s1 + $0xa0] sm:$0xff]  ;;  %v42_v11 = vld [vmem:[%s479_s1 + $0xa8] sm:$0xff] }
   0x5   :  { %v39_v12 = vld [vmem:[%s479_s1 + $0x90] sm:$0xff]  ;;  %v40_v13 = vld [vmem:[%s479_s1 + $0x98] sm:$0xff]  ;;  %v37_v17 = vld [vmem:[%s479_s1 + $0x80] sm:$0xff] }
   0x6   :  { %61 = vmatpush.msra.mxu0 %v47_v4  ;;  %81 = vmatpush.msra.mxu1 %v48_v5  ;;  %v116_v14 = vld [vmem:[%s481_s3 + $0x78] sm:$0xff]  ;;  %v115_v15 = vld [vmem:[%s481_s3 + $0x70] sm:$0xff]  ;;  %v38_v18 = vld [vmem:[%s479_s1 + $0x88] sm:$0xff] }
   0x7   :  { %v132_v16 = vld [vmem:[%s481_s3 + $0xf8] sm:$0xff]  ;;  %137 = vmatpush.msra.mxu2 %v116_v14  ;;  %v131_v19 = vld [vmem:[%s481_s3 + $0xf0] sm:$0xff]  ;;  %v114_v20 = vld [vmem:[%s481_s3 + $0x68] sm:$0xff] }
   0x8   :  { %62 = vmatpush.msra.mxu0 %v45_v6  ;;  %82 = vmatpush.msra.mxu1 %v46_v7  ;;  %v130_v21 = vld [vmem:[%s481_s3 + $0xe8] sm:$0xff]  ;;  %v35_v22 = vld [vmem:[%s479_s1 + $0x70] sm:$0xff]  ;;  %v36_v23 = vld [vmem:[%s479_s1 + $0x78] sm:$0xff] }
   0x9   :  { %157 = vmatpush.msra.mxu3 %v132_v16  ;;  %138 = vmatpush.msra.mxu2 %v115_v15  ;;  %v113_v24 = vld [vmem:[%s481_s3 + $0x60] sm:$0xff]  ;;  %v34_v27 = vld [vmem:[%s479_s1 + $0x68] sm:$0xff]  ;;  %v112_v28 = vld [vmem:[%s481_s3 + $0x58] sm:$0xff] }
   0xa   :  { %63 = vmatpush.msra.mxu0 %v43_v8  ;;  %83 = vmatpush.msra.mxu1 %v44_v9  ;;  %v129_v25 = vld [vmem:[%s481_s3 + $0xe0] sm:$0xff]  ;;  %v128_v29 = vld [vmem:[%s481_s3 + $0xd8] sm:$0xff]  ;;  %v31_v30 = vld [vmem:[%s479_s1 + $0x50] sm:$0xff] }
   0xb   :  { %158 = vmatpush.msra.mxu3 %v131_v19  ;;  %v33_v26 = vld [vmem:[%s479_s1 + $0x60] sm:$0xff]  ;;  %139 = vmatpush.msra.mxu2 %v114_v20  ;;  %v32_v31 = vld [vmem:[%s479_s1 + $0x58] sm:$0xff]  ;;  %v111_v32 = vld [vmem:[%s481_s3 + $0x50] sm:$0xff] }
   0xc   :  { %64 = vmatpush.msra.mxu0 %v41_v10  ;;  %84 = vmatpush.msra.mxu1 %v42_v11  ;;  %v127_v33 = vld [vmem:[%s481_s3 + $0xd0] sm:$0xff]  ;;  %v29_v34 = vld [vmem:[%s479_s1 + $0x40] sm:$0xff]  ;;  %v30_v35 = vld [vmem:[%s479_s1 + $0x48] sm:$0xff] }
   0xd   :  { %159 = vmatpush.msra.mxu3 %v130_v21  ;;  %140 = vmatpush.msra.mxu2 %v113_v24  ;;  %v110_v36 = vld [vmem:[%s481_s3 + $0x48] sm:$0xff]  ;;  %v27_v38 = vld [vmem:[%s479_s1 + $0x30] sm:$0xff]  ;;  %v28_v39 = vld [vmem:[%s479_s1 + $0x38] sm:$0xff] }
   0xe   :  { %65 = vmatpush.msra.mxu0 %v39_v12  ;;  %85 = vmatpush.msra.mxu1 %v40_v13  ;;  %v126_v37 = vld [vmem:[%s481_s3 + $0xc8] sm:$0xff]  ;;  %v109_v40 = vld [vmem:[%s481_s3 + $0x40] sm:$0xff]  ;;  %v108_v44 = vld [vmem:[%s481_s3 + $0x38] sm:$0xff] }
   0xf   :  { %160 = vmatpush.msra.mxu3 %v129_v25  ;;  %141 = vmatpush.msra.mxu2 %v112_v28  ;;  %v125_v41 = vld [vmem:[%s481_s3 + $0xc0] sm:$0xff]  ;;  %v26_v43 = vld [vmem:[%s479_s1 + $0x28] sm:$0xff]  ;;  %v124_v45 = vld [vmem:[%s481_s3 + $0xb8] sm:$0xff] }
  0x10   :  { %66 = vmatpush.msra.mxu0 %v37_v17  ;;  %86 = vmatpush.msra.mxu1 %v38_v18  ;;  %v25_v42 = vld [vmem:[%s479_s1 + $0x20] sm:$0xff]  ;;  %v23_v46 = vld [vmem:[%s479_s1 + $0x10] sm:$0xff]  ;;  %v24_v47 = vld [vmem:[%s479_s1 + $0x18] sm:$0xff] }
  0x11   :  { %161 = vmatpush.msra.mxu3 %v128_v29  ;;  %142 = vmatpush.msra.mxu2 %v111_v32  ;;  %v107_v48 = vld [vmem:[%s481_s3 + $0x30] sm:$0xff]  ;;  %v21_v50 = vld [vmem:[%s479_s1] sm:$0xff]  ;;  %v22_v51 = vld [vmem:[%s479_s1 + $0x8] sm:$0xff] }
  0x12   :  { %67 = vmatpush.msra.mxu0 %v35_v22  ;;  %87 = vmatpush.msra.mxu1 %v36_v23  ;;  %v123_v49 = vld [vmem:[%s481_s3 + $0xb0] sm:$0xff]  ;;  %v20_v52 = vld [vmem:[%s478_s0] sm:$0xff]  ;;  %v106_v53 = vld [vmem:[%s481_s3 + $0x28] sm:$0xff] }
  0x13   :  { %162 = vmatpush.msra.mxu3 %v127_v33  ;;  %143 = vmatpush.msra.mxu2 %v110_v36  ;;  %v122_v54 = vld [vmem:[%s481_s3 + $0xa8] sm:$0xff]  ;;  %v105_v55 = vld [vmem:[%s481_s3 + $0x20] sm:$0xff]  ;;  %v104_v57 = vld [vmem:[%s481_s3 + $0x18] sm:$0xff] }
  0x14   :  { %68 = vmatpush.msra.mxu0 %v33_v26  ;;  %88 = vmatpush.msra.mxu1 %v34_v27  ;;  %v121_v56 = vld [vmem:[%s481_s3 + $0xa0] sm:$0xff]  ;;  %v103_v58 = vld [vmem:[%s481_s3 + $0x10] sm:$0xff]  ;;  %v120_v59 = vld [vmem:[%s481_s3 + $0x98] sm:$0xff] }
  0x15   :  { %163 = vmatpush.msra.mxu3 %v126_v37  ;;  %144 = vmatpush.msra.mxu2 %v109_v40  ;;  %v102_v60 = vld [vmem:[%s481_s3 + $0x8] sm:$0xff]  ;;  %v119_v61 = vld [vmem:[%s481_s3 + $0x90] sm:$0xff]  ;;  %v101_v62 = vld [vmem:[%s481_s3] sm:$0xff] }
  0x16   :  { %69 = vmatpush.msra.mxu0 %v31_v30  ;;  %89 = vmatpush.msra.mxu1 %v32_v31  ;;  %v118_v63 = vld [vmem:[%s481_s3 + $0x88] sm:$0xff]  ;;  %v117_v0 = vld [vmem:[%s481_s3 + $0x80] sm:$0xff] }
  0x17   :  { %164 = vmatpush.msra.mxu3 %v125_v41  ;;  %145 = vmatpush.msra.mxu2 %v108_v44  ;;  %v53_v1 = vld [vmem:[%s480_s2] sm:$0x3] }
  0x18   :  { %70 = vmatpush.msra.mxu0 %v29_v34  ;;  %90 = vmatpush.msra.mxu1 %v30_v35  ;;  %v55_v2 = vperm.slane %v53_v1, 0  ;;  %v56_v3 = vperm.slane %v53_v1, 1  ;;  %v239_v10 = vld [vmem:[%s482_s4] ss:$0 sm:$0xff] }
  0x19   :  { %165 = vmatpush.msra.mxu3 %v124_v45  ;;  %146 = vmatpush.msra.mxu2 %v107_v48 }
  0x1a   :  { %71 = vmatpush.msra.mxu0 %v27_v38  ;;  %91 = vmatpush.msra.mxu1 %v28_v39 }
  0x1b   :  { %166 = vmatpush.msra.mxu3 %v123_v49  ;;  %147 = vmatpush.msra.mxu2 %v106_v53 }
  0x1c   :  { %72 = vmatpush.msra.mxu0 %v25_v42  ;;  %92 = vmatpush.msra.mxu1 %v26_v43 }
  0x1d   :  { %167 = vmatpush.msra.mxu3 %v122_v54  ;;  %148 = vmatpush.msra.mxu2 %v105_v55 }
  0x1e   :  { %73 = vmatpush.msra.mxu0 %v23_v46  ;;  %93 = vmatpush.msra.mxu1 %v24_v47 }
  0x1f   :  { %168 = vmatpush.msra.mxu3 %v121_v56  ;;  %149 = vmatpush.msra.mxu2 %v104_v57 }
  0x20   :  { %74 = vmatpush.msra.mxu0 %v21_v50  ;;  %94 = vmatpush.msra.mxu1 %v22_v51 }
  0x21   :  { %75 = vmatmul.f32.vlgmr.msra.gmra.mxu0 %v20_v52  ;;  %95 = vmatmul.f32.vlgmr.msra.gmra.mxu1 %v20_v52 }
  0x22   :  { %150 = vmatpush.msra.mxu2 %v103_v58  ;;  %169 = vmatpush.msra.mxu3 %v120_v59 }
  0x24   :  { %151 = vmatpush.msra.mxu2 %v102_v60  ;;  %170 = vmatpush.msra.mxu3 %v119_v61 }
  0x26   :  { %152 = vmatpush.msra.mxu2 %v101_v62  ;;  %171 = vmatpush.msra.mxu3 %v118_v63 }
  0x28   :  { %172 = vmatpush.msra.mxu3 %v117_v0 }
  0x9e   :  { %v76_v4 = vpop.f32.mrf.mxu0  ;;  %v96_v5 = vpop.f32.mrf.mxu1 }
  0x9f   :  { %v77_v6 = vadd.f32 %v76_v4, %v55_v2  ;;  %v97_v7 = vadd.f32 %v96_v5, %v56_v3 }
  0xa1   :  { %v99_v8 = vmax.f32 %v77_v6, 0.0  ;;  %v100_v9 = vmax.f32 %v97_v7, 0.0 }
  0xa3   :  { %153 = vmatmul.f32.vlgmr.msra.gmra.mxu2 %v99_v8  ;;  %173 = vmatmul.f32.vlgmr.msra.gmra.mxu3 %v100_v9 }
 0x126   :  { %v154_v11 = vpop.f32.mrf.mxu2  ;;  %v174_v12 = vpop.f32.mrf.mxu3 }
 0x127   :  { %v155_v13 = vadd.f32 %v239_v10, %v154_v11 }
 0x129   :  { %v175_v14 = vadd.f32 %v174_v12, %v155_v13 }
 0x12b   :  { %v177_v15 = vsub.f32 0.0, %v175_v14 }
 0x12d   :  { %v178_v16 = vmul.f32 1.442695, %v177_v15 }
 0x12f   :  { %240 = vpow2.f32 %v178_v16 }
 0x135   :  { %v241_v17 = vpop.eup %240 }
 0x136   :  { %v180_v18 = vadd.f32 1.0, %v241_v17 }
 0x138   :  { %242 = vrcp.f32 %v180_v18  ;;  %v192_v22 = vand.u32 2147483648, %v180_v18  ;;  %v190_v24 = vand.u32 2147483647, %v180_v18  ;;  %vm186_vm1 = vweird.f32 %v180_v18 }
 0x13a   :  { %v193_v26 = vor.u32 1.1754944e-38, %v192_v22  ;;  %vm191_vm4 = vcmp.eq.f32.partialorder %v190_v24, 8.507059e+37 }
 0x13e   :  { %v243_v19 = vpop.eup %242 }
 0x13f   :  { %v182_v20 = vmul.f32 %v243_v19, %v180_v18  ;;  %vm187_vm0 = vweird.f32 %v243_v19 }
 0x140   :  { %vm188_vm2 = vmor %vm186_vm1, %vm187_vm0 }
 0x141   :  { %v183_v21 = vsub.f32 1.0, %v182_v20 }
 0x143   :  { %v184_v23 = vmul.f32 %v243_v19, %v183_v21 }
 0x145   :  { %v185_v25 = vadd.f32 %v243_v19, %v184_v23 }
 0x147   :  { %v189_v27 = vsel %vm188_vm2, %v243_v19, %v185_v25 }
 0x148   :  { %v194_v28 = vsel %vm191_vm4, %v193_v26, %v189_v27 }
 0x149   :  { %197 = vst.msk [vmem:[#allocation2] sm:$0xff] %vm196_vm3, %v194_v28 }
 0x150   :  { %v216_v29 = vld [vmem:[#allocation2] sm:$0x1] }
 0x151   :  { %217 = vst [vmem:[%s483_s5] sm:$0x1] %v216_v29 }

</bundles_post_ra>
